<compile_context>
chip_gen: v7x
topology: tpu7x:2x2x1
jax: 0.10.0
libtpu: 0.0.40
codegen_flags: <defaults>
</compile_context>

<pallas_src>
import functools

import jax
import jax.numpy as jnp
from jax.experimental import pallas as pl
from jax.experimental.pallas import tpu as pltpu


def _round_up(n, m):
    return ((n + m - 1) // m) * m


def _vmem_limit(est_bytes):
    # 2x margin + headroom, never below the common 32 MiB default, and kept well
    # under v7x's 64 MiB physical VMEM.
    return int(min(max(2 * est_bytes + (8 << 20), 32 << 20), 56 << 20))


# ----------------------------------------------------------------------------
# Kernel 1: M/N-tiled  [optional BN(prev)+ReLU on input] -> matmul -> partial stats
# x: (M, K) bf16   w: (K, N) bf16   scale/shift: (1, K) f32
# outputs: y (M, N) bf16, partial sum / sumsq (gm, 1, N) f32 (reduced in JAX).
# ----------------------------------------------------------------------------
def _matmul_bn_stats_kernel(x_ref, w_ref, scale_ref, shift_ref,
                            y_ref, sum_ref, sumsq_ref,
                            *, input_bn_relu: bool, m_total: int, ragged: bool):
    x = x_ref[...]
    if input_bn_relu:
        xf = jnp.maximum(x.astype(jnp.float32) * scale_ref[...] + shift_ref[...], 0.0)
        x = xf.astype(jnp.bfloat16)
    if ragged:
        # Mask rows past the true M (after BN+ReLU: relu(shift) != 0 is not inert).
        tm = x.shape[0]
        i = pl.program_id(1)
        rows = jax.lax.broadcasted_iota(jnp.int32, (tm, 1), 0) + i * tm
        x = jnp.where(rows < m_total, x, jnp.zeros_like(x))

    y = jnp.dot(x, w_ref[...], preferred_element_type=jnp.float32)   # (tm, tn) f32
    sum_ref[0] = jnp.sum(y, axis=0, keepdims=True)
    sumsq_ref[0] = jnp.sum(y * y, axis=0, keepdims=True)
    y_ref[...] = y.astype(y_ref.dtype)


def matmul_bn_stats(x, w, scale, shift, *, input_bn_relu):
    M, K = x.shape
    K2, N = w.shape
    assert K == K2
    tm = M if M <= 512 else 512
    tn = N if N <= 512 else 512
    gm = pl.cdiv(M, tm)
    gn = pl.cdiv(N, tn)
    ragged = (M % tm) != 0

    kernel = functools.partial(_matmul_bn_stats_kernel,
                               input_bn_relu=input_bn_relu,
                               m_total=M, ragged=ragged)
    est = (2 * 2 * (tm * K + K * tn + tm * tn)      # bf16 blocks, double-buffered
           + 2 * tm * tn * 4                        # f32 dot result + y*y temp
           + 8 * K * 4 + 8 * tn * 4)

    y, s, ss = pl.pallas_call(
        kernel,
        out_shape=(jax.ShapeDtypeStruct((M, N), jnp.bfloat16),
                   jax.ShapeDtypeStruct((gm, 1, N), jnp.float32),
                   jax.ShapeDtypeStruct((gm, 1, N), jnp.float32)),
        grid=(gn, gm),                               # N tiles outer, M tiles inner
        in_specs=[
            pl.BlockSpec((tm, K), lambda j, i: (i, 0)),
            pl.BlockSpec((K, tn), lambda j, i: (0, j)),   # resident across M tiles
            pl.BlockSpec((1, K), lambda j, i: (0, 0)),
            pl.BlockSpec((1, K), lambda j, i: (0, 0)),
        ],
        out_specs=(
            pl.BlockSpec((tm, tn), lambda j, i: (i, j)),
            pl.BlockSpec((1, 1, tn), lambda j, i: (i, 0, j)),   # per-tile partials
            pl.BlockSpec((1, 1, tn), lambda j, i: (i, 0, j)),
        ),
        compiler_params=pltpu.CompilerParams(
            dimension_semantics=("parallel", "parallel"),
            vmem_limit_bytes=_vmem_limit(est)),
    )(x, w, scale, shift)
    # Tiny stable reduction of per-tile partials in f32.
    return y, jnp.sum(s, axis=0), jnp.sum(ss, axis=0)       # (1, N), (1, N)


# ----------------------------------------------------------------------------
# Kernel 2: per-image 3x3 conv (stride=1, pad=1), BN1+ReLU and spatial zero-pad
#           applied in-kernel, kw taps concatenated along channels so the conv is
#           3 matmuls of K=3*Cp.  Per-image partial sum/sumsq outputs.
# x: (B, H, W, Cp) bf16 (unpadded)   w_cat: (3, 3*Cp, Cout) bf16
# ----------------------------------------------------------------------------
def _conv3x3_bn_stats_kernel(x_ref, w_ref, scale_ref, shift_ref,
                             y_ref, sum_ref, sumsq_ref):
    _, H, W, cp = x_ref.shape
    cout = w_ref.shape[-1]

    # BN1 + ReLU on the unpadded slab (no border mask needed).
    x = x_ref[0]                                                     # (H, W, Cp)
    a = jnp.maximum(x.astype(jnp.float32) * scale_ref[...] + shift_ref[...], 0.0)
    a = a.astype(jnp.bfloat16)

    # Build the 3 kw taps (input cols c-1, c, c+1) with 2 sublane shifts, then
    # concatenate along channels -> one K=3*Cp matmul per kh.
    zc = jnp.zeros((H, 1, cp), jnp.bfloat16)
    t0 = jnp.concatenate([zc, a[:, :W - 1, :]], axis=1)              # col c-1
    t2 = jnp.concatenate([a[:, 1:, :], zc], axis=1)                  # col c+1
    a_cat = jnp.concatenate([t0, a, t2], axis=-1)                    # (H, W, 3Cp)
    zr = jnp.zeros((1, W, 3 * cp), jnp.bfloat16)
    a_cat = jnp.concatenate([zr, a_cat, zr], axis=0)                 # (H+2, W, 3Cp)

    acc = jnp.zeros((H * W, cout), jnp.float32)
    for kh in range(3):
        patch = a_cat[kh:kh + H].reshape(H * W, 3 * cp)
        acc = acc + jnp.dot(patch, w_ref[kh], preferred_element_type=jnp.float32)

    sum_ref[0] = jnp.sum(acc, axis=0, keepdims=True)                 # per-image partial
    sumsq_ref[0] = jnp.sum(acc * acc, axis=0, keepdims=True)
    y_ref[0] = acc.reshape(H, W, cout).astype(y_ref.dtype)


def conv3x3_bn_stats(x, w_cat, scale, shift):
    B, H, W, Cp = x.shape
    Cout = w_cat.shape[-1]
    # TODO(synk): for very large H*W (e.g. 56x56 with wide channels on v7x), row-tile
    # with a 1-row halo (grid=(B, H//th)) instead of one whole image per grid step.
    est = (2 * 2 * H * W * (Cp + Cout) * 2           # double-buffered in/out bf16
           + 3 * 3 * Cp * Cout * 2                   # weights
           + H * W * Cp * 6                          # f32 + bf16 BN'd slab
           + (H + 2) * W * 3 * Cp * 2 * 2            # a_cat + one patch
           + H * W * Cout * 8)                       # f32 acc + square
    y, s, ss = pl.pallas_call(
        _conv3x3_bn_stats_kernel,
        out_shape=(jax.ShapeDtypeStruct((B, H, W, Cout), jnp.bfloat16),
                   jax.ShapeDtypeStruct((B, 1, Cout), jnp.float32),
                   jax.ShapeDtypeStruct((B, 1, Cout), jnp.float32)),
        grid=(B,),
        in_specs=[
            pl.BlockSpec((1, H, W, Cp), lambda b: (b, 0, 0, 0)),
            pl.BlockSpec((3, 3 * Cp, Cout), lambda b: (0, 0, 0)),
            pl.BlockSpec((1, Cp), lambda b: (0, 0)),
            pl.BlockSpec((1, Cp), lambda b: (0, 0)),
        ],
        out_specs=(
            pl.BlockSpec((1, H, W, Cout), lambda b: (b, 0, 0, 0)),
            pl.BlockSpec((1, 1, Cout), lambda b: (b, 0, 0)),
            pl.BlockSpec((1, 1, Cout), lambda b: (b, 0, 0)),
        ),
        compiler_params=pltpu.CompilerParams(
            dimension_semantics=("parallel",),
            vmem_limit_bytes=_vmem_limit(est)),
    )(x, w_cat, scale, shift)
    return y, jnp.sum(s, axis=0), jnp.sum(ss, axis=0)       # (1, Cout), (1, Cout)


# ----------------------------------------------------------------------------
# Kernel 3: purely elementwise epilogue: BN3 apply + per-image SE gate * x
#           + residual add + final ReLU.  HW-tiled, both axes "parallel", bf16 out.
# y3/res: (B, HW, C) bf16   gate: (B, 1, C) f32   scale/shift: (1, C) f32
# ----------------------------------------------------------------------------
def _se_residual_kernel(y3_ref, res_ref, gate_ref, scale_ref, shift_ref, o_ref):
    a = y3_ref[0].astype(jnp.float32) * scale_ref[...] + shift_ref[...]   # (th, C)
    out = a * gate_ref[0] + res_ref[0].astype(jnp.float32)
    o_ref[0] = jnp.maximum(out, 0.0).astype(o_ref.dtype)


def se_residual(y3, res, gate, scale3, shift3):
    B, HW, C = y3.shape
    th = HW if HW <= 512 else 512
    gh = pl.cdiv(HW, th)
    est = 2 * 3 * th * C * 2 + 3 * th * C * 4
    return pl.pallas_call(
        _se_residual_kernel,
        out_shape=jax.ShapeDtypeStruct((B, HW, C), jnp.bfloat16),
        grid=(B, gh),
        in_specs=[
            pl.BlockSpec((1, th, C), lambda b, h: (b, h, 0)),
            pl.BlockSpec((1, th, C), lambda b, h: (b, h, 0)),
            pl.BlockSpec((1, 1, C), lambda b, h: (b, 0, 0)),
            pl.BlockSpec((1, C), lambda b, h: (0, 0)),
            pl.BlockSpec((1, C), lambda b, h: (0, 0)),
        ],
        out_specs=pl.BlockSpec((1, th, C), lambda b, h: (b, h, 0)),
        compiler_params=pltpu.CompilerParams(
            dimension_semantics=("parallel", "parallel"),
            vmem_limit_bytes=_vmem_limit(est)),
    )(y3, res, gate, scale3, shift3)


# ----------------------------------------------------------------------------
# BatchNorm batch-stats -> per-channel scale/shift (tiny (1, N) math, plain JAX)
# ----------------------------------------------------------------------------
def bn_scale_shift(channel_sum, channel_sumsq, gamma, beta, m, eps=1e-5):
    mean = channel_sum / m
    var = jnp.maximum(channel_sumsq / m - mean * mean, 0.0)   # biased, like PyTorch train
    scale = gamma * jax.lax.rsqrt(var + eps)
    shift = beta - mean * scale
    return scale, shift


# ----------------------------------------------------------------------------
# SEBottleneck forward (stride=1, downsample=None => inplanes == planes*4)
# ----------------------------------------------------------------------------
def se_bottleneck_forward(x_nchw, params):
    B, Cin, H, W = x_nchw.shape
    planes = params["planes"]
    c4 = 4 * planes
    cin_p, p_p, c4_p = params["cin_p"], params["p_p"], params["c4_p"]
    assert Cin == c4, "downsample=None requires inplanes == planes*4"
    M = B * H * W
    HW = H * W

    # NCHW -> NHWC, pad channels to a lane-dense multiple of 128, cast bf16
    x = jnp.transpose(x_nchw, (0, 2, 3, 1))
    x_pad = jnp.pad(x, ((0, 0), (0, 0), (0, 0), (0, cin_p - Cin))).astype(jnp.bfloat16)
    x_flat = x_pad.reshape(M, cin_p)

    ones_k = jnp.ones((1, cin_p), jnp.float32)
    zeros_k = jnp.zeros((1, cin_p), jnp.float32)

    # conv1 (1x1) + BN1 batch stats
    y1, s1, ss1 = matmul_bn_stats(x_flat, params["w1"], ones_k, zeros_k,
                                  input_bn_relu=False)
    scale1, shift1 = bn_scale_shift(s1, ss1, params["g1"], params["b1"], M)

    # conv2 (3x3, stride=1, pad=1): BN1+ReLU and spatial zero-pad done in-kernel
    # (no HBM pad round trip).  Weights pre-concatenated along kw: (3, 3*Cp, Cout).
    w2_cat = params["w2"].reshape(3, 3, p_p, p_p).reshape(3, 3 * p_p, p_p)
    y2, s2, ss2 = conv3x3_bn_stats(y1.reshape(B, H, W, p_p), w2_cat, scale1, shift1)
    scale2, shift2 = bn_scale_shift(s2, ss2, params["g2"], params["b2"], M)

    # conv3 (1x1): BN2+ReLU applied in-kernel to the input tiles
    y3, s3, ss3 = matmul_bn_stats(y2.reshape(M, p_p), params["w3"], scale2, shift2,
                                  input_bn_relu=True)
    scale3, shift3 = bn_scale_shift(s3, ss3, params["g3"], params["b3"], M)

    # SE gate: per-image global-avg-pool of bn3(y3) + the two tiny FCs in plain JAX
    # (they are (B, C)-sized; keeping them out of the memory-bound epilogue kernel).
    # TODO(synk): fuse the per-image pooled sums into conv3's partial-stats outputs
    # when the M tiling is image-aligned, saving one extra HBM read of y3.
    pooled = jnp.mean(y3.reshape(B, HW, c4_p).astype(jnp.float32), axis=1)   # (B, C)
    pooled = pooled * scale3 + shift3                                        # bn3 on pooled
    h = jnp.maximum(jnp.dot(pooled.astype(jnp.bfloat16), params["fc1_w"],
                            preferred_element_type=jnp.float32) + params["fc1_b"], 0.0)
    gate = jax.nn.sigmoid(jnp.dot(h.astype(jnp.bfloat16), params["fc2_w"],
                                  preferred_element_type=jnp.float32) + params["fc2_b"])
    gate = gate.reshape(B, 1, c4_p).astype(jnp.float32)

    # BN3 apply + SE scaling + residual add + final ReLU (elementwise, tiled)
    out = se_residual(y3.reshape(B, HW, c4_p), x_pad.reshape(B, HW, c4_p),
                      gate, scale3, shift3)                    # (B, HW, c4_p) bf16

    out = out.reshape(B, H, W, c4_p)[:, :, :, :c4]
    return jnp.transpose(out, (0, 3, 1, 2))                    # back to NCHW


# ----------------------------------------------------------------------------
# Deterministic parameter construction (shapes follow the nn.Module __init__).
# Conv weights are stored pre-transposed for matmul:
#   1x1: (Cin, Cout);  3x3: (kh*3+kw, Cin, Cout)
# (porting real PyTorch Conv2d weights (Cout,Cin,kh,kw) needs transpose((2,3,1,0))).
# Padded channel rows/cols are zero; padded gamma/beta are zero, so padded lanes
# stay exactly 0 through the whole block.
# ----------------------------------------------------------------------------
def make_params(key, inplanes, planes, reduction=8):
    c4 = planes * 4
    cr = c4 // reduction
    cin_p = _round_up(inplanes, 128)
    p_p = _round_up(planes, 128)
    c4_p = _round_up(c4, 128)
    cr_p = _round_up(cr, 128)
    keys = jax.random.split(key, 8)

    def nrm(k, shape, scale=0.1):
        return (scale * jax.random.normal(k, shape)).astype(jnp.float32)

    def pad2(a, r, c):
        return jnp.pad(a, ((0, r - a.shape[0]), (0, c - a.shape[1])))

    def gb(val_g, val_b, n, n_p):
        g = jnp.pad(jnp.full((1, n), val_g, jnp.float32), ((0, 0), (0, n_p - n)))
        b = jnp.pad(jnp.full((1, n), val_b, jnp.float32), ((0, 0), (0, n_p - n)))
        return g, b

    g1, b1 = gb(1.0, 0.0, planes, p_p)
    g2, b2 = gb(1.1, 0.05, planes, p_p)
    g3, b3 = gb(0.9, -0.02, c4, c4_p)

    params = {
        "planes": planes, "cin_p": cin_p, "p_p": p_p, "c4_p": c4_p,
        "w1": pad2(nrm(keys[0], (inplanes, planes)), cin_p, p_p).astype(jnp.bfloat16),
        "g1": g1, "b1": b1,
        "w2": jnp.pad(nrm(keys[1], (9, planes, planes)),
                      ((0, 0), (0, p_p - planes), (0, p_p - planes))).astype(jnp.bfloat16),
        "g2": g2, "b2": b2,
        "w3": pad2(nrm(keys[2], (planes, c4)), p_p, c4_p).astype(jnp.bfloat16),
        "g3": g3, "b3": b3,
        "fc1_w": pad2(nrm(keys[3], (c4, cr)), c4_p, cr_p).astype(jnp.bfloat16),
        "fc1_b": jnp.pad(nrm(keys[4], (1, cr)), ((0, 0), (0, cr_p - cr))),
        "fc2_w": pad2(nrm(keys[5], (cr, c4)), cr_p, c4_p).astype(jnp.bfloat16),
        "fc2_b": jnp.pad(nrm(keys[6], (1, c4)), ((0, 0), (0, c4_p - c4))),
    }
    return params


if __name__ == "__main__":
    # small shapes: batch=2, inplanes=16, planes=4 (planes*4 == inplanes so
    # stride=1, downsample=None is valid), spatial 8x8
    B, inplanes, planes, H, W = 2, 16, 4, 8, 8

    key = jax.random.PRNGKey(0)
    kx, kp = jax.random.split(key)
    x = jax.random.normal(kx, (B, inplanes, H, W), dtype=jnp.float32)  # NCHW like PyTorch
    params = make_params(kp, inplanes, planes, reduction=8)

    out = se_bottleneck_forward(x, params)
    out = jax.block_until_ready(out)
    assert out.shape == (B, planes * 4, H, W)
    assert bool(jnp.all(out >= 0.0))  # final ReLU
    print("KERNEL_OK")
</pallas_src>

<mosaic_0001>
module attributes {stable_mosaic.version = 11 : i64} {
  func.func @_matmul_bn_stats_kernel(%arg0: i32, %arg1: i32, %arg2: memref<128x128xbf16, #tpu.memory_space<vmem>>, %arg3: memref<128x128xbf16, #tpu.memory_space<vmem>>, %arg4: memref<1x128xf32, #tpu.memory_space<vmem>>, %arg5: memref<1x128xf32, #tpu.memory_space<vmem>>, %arg6: memref<128x128xbf16, #tpu.memory_space<vmem>>, %arg7: memref<1x1x128xf32, #tpu.memory_space<vmem>>, %arg8: memref<1x1x128xf32, #tpu.memory_space<vmem>>) attributes {dimension_semantics = [#tpu.dimension_semantics<parallel>, #tpu.dimension_semantics<parallel>], iteration_bounds = array<i64: 1, 1>, scalar_prefetch = 0 : i64, scratch_operands = 0 : i64, tpu.core_type = #tpu.core_type<tc>, window_params = [{transform_indices = @transform_0, window_bounds = array<i64: 128, 128>}, {transform_indices = @transform_1, window_bounds = array<i64: 128, 128>}, {pipeline_mode = #tpu.pipeline_mode<synchronous>, transform_indices = @transform_2, window_bounds = array<i64: 1, 128>}, {pipeline_mode = #tpu.pipeline_mode<synchronous>, transform_indices = @transform_3, window_bounds = array<i64: 1, 128>}, {transform_indices = @transform_4, window_bounds = array<i64: 128, 128>}, {transform_indices = @transform_5, window_bounds = array<i64: 1, 1, 128>}, {transform_indices = @transform_6, window_bounds = array<i64: 1, 1, 128>}]} {
    %c0 = arith.constant 0 : index
    %c0_0 = arith.constant 0 : index
    %0 = vector.load %arg2[%c0, %c0_0] : memref<128x128xbf16, #tpu.memory_space<vmem>>, vector<128x128xbf16>
    %c0_1 = arith.constant 0 : index
    %c0_2 = arith.constant 0 : index
    %1 = vector.load %arg3[%c0_1, %c0_2] : memref<128x128xbf16, #tpu.memory_space<vmem>>, vector<128x128xbf16>
    %cst = arith.constant dense<0.000000e+00> : vector<128x128xf32>
    %2 = tpu.matmul %0, %1, %cst {dimension_numbers = #tpu.dot_dimension_numbers<[1], [0], [0], [1], [0, 0, 1, 1], [], []>} : vector<128x128xbf16>, vector<128x128xbf16>, vector<128x128xf32> -> vector<128x128xf32>
    %cst_3 = arith.constant dense<0.000000e+00> : vector<128xf32>
    %3 = vector.multi_reduction <add>, %2, %cst_3 [0] : vector<128x128xf32> to vector<128xf32>
    %4 = vector.shape_cast %3 : vector<128xf32> to vector<1x128xf32>
    %c0_4 = arith.constant 0 : index
    %c0_5 = arith.constant 0 : index
    %c0_6 = arith.constant 0 : index
    %5 = vector.load %arg7[%c0_4, %c0_5, %c0_6] : memref<1x1x128xf32, #tpu.memory_space<vmem>>, vector<1x1x128xf32>
    %6 = vector.shape_cast %5 : vector<1x1x128xf32> to vector<1x128xf32>
    %7 = vector.shape_cast %4 : vector<1x128xf32> to vector<1x1x128xf32>
    tpu.vector_store %arg7[%c0_4, %c0_5, %c0_6], %7 {strides = array<i32>} : memref<1x1x128xf32, #tpu.memory_space<vmem>>, vector<1x1x128xf32>,
    %8 = arith.mulf %2, %2 : vector<128x128xf32>
    %cst_7 = arith.constant dense<0.000000e+00> : vector<128xf32>
    %9 = vector.multi_reduction <add>, %8, %cst_7 [0] : vector<128x128xf32> to vector<128xf32>
    %10 = vector.shape_cast %9 : vector<128xf32> to vector<1x128xf32>
    %c0_8 = arith.constant 0 : index
    %c0_9 = arith.constant 0 : index
    %c0_10 = arith.constant 0 : index
    %11 = vector.load %arg8[%c0_8, %c0_9, %c0_10] : memref<1x1x128xf32, #tpu.memory_space<vmem>>, vector<1x1x128xf32>
    %12 = vector.shape_cast %11 : vector<1x1x128xf32> to vector<1x128xf32>
    %13 = vector.shape_cast %10 : vector<1x128xf32> to vector<1x1x128xf32>
    tpu.vector_store %arg8[%c0_8, %c0_9, %c0_10], %13 {strides = array<i32>} : memref<1x1x128xf32, #tpu.memory_space<vmem>>, vector<1x1x128xf32>,
    %14 = arith.truncf %2 : vector<128x128xf32> to vector<128x128xbf16>
    %c0_11 = arith.constant 0 : index
    %c0_12 = arith.constant 0 : index
    %15 = vector.load %arg6[%c0_11, %c0_12] : memref<128x128xbf16, #tpu.memory_space<vmem>>, vector<128x128xbf16>
    tpu.vector_store %arg6[%c0_11, %c0_12], %14 {strides = array<i32>} : memref<128x128xbf16, #tpu.memory_space<vmem>>, vector<128x128xbf16>,
    return
  }
  func.func @transform_0(%arg0: i32, %arg1: i32) -> (i32, i32) {
    %c0_i32 = arith.constant 0 : i32
    %c0_i32_0 = arith.constant 0 : i32
    return %arg1, %c0_i32 : i32, i32
  }
  func.func @transform_1(%arg0: i32, %arg1: i32) -> (i32, i32) {
    %c0_i32 = arith.constant 0 : i32
    %c0_i32_0 = arith.constant 0 : i32
    return %c0_i32, %arg0 : i32, i32
  }
  func.func @transform_2(%arg0: i32, %arg1: i32) -> (i32, i32) {
    %c0_i32 = arith.constant 0 : i32
    %c0_i32_0 = arith.constant 0 : i32
    %c0_i32_1 = arith.constant 0 : i32
    return %c0_i32, %c0_i32_0 : i32, i32
  }
  func.func @transform_3(%arg0: i32, %arg1: i32) -> (i32, i32) {
    %c0_i32 = arith.constant 0 : i32
    %c0_i32_0 = arith.constant 0 : i32
    %c0_i32_1 = arith.constant 0 : i32
    return %c0_i32, %c0_i32_0 : i32, i32
  }
  func.func @transform_4(%arg0: i32, %arg1: i32) -> (i32, i32) {
    %c0_i32 = arith.constant 0 : i32
    return %arg1, %arg0 : i32, i32
  }
  func.func @transform_5(%arg0: i32, %arg1: i32) -> (i32, i32, i32) {
    %c0_i32 = arith.constant 0 : i32
    %c0_i32_0 = arith.constant 0 : i32
    return %arg1, %c0_i32, %arg0 : i32, i32, i32
  }
  func.func @transform_6(%arg0: i32, %arg1: i32) -> (i32, i32, i32) {
    %c0_i32 = arith.constant 0 : i32
    %c0_i32_0 = arith.constant 0 : i32
    return %arg1, %c0_i32, %arg0 : i32, i32, i32
  }
}

</mosaic_0001>

<bundles_post_ra>
// kernel: tpu_custom_call.1
= control target key start
LH: loop header
LB: loop body
LE: loop exit
PB: predicated region body
PF: predicated region fallthrough
CT: control target
= control target key end

     0   :  { %12 = vsyncpa [#allocation3], 0  ;;  %s904_s0 = inlined_call_operand.hbm [shape: bf16[128,128], index: 0, kind: input, shape index: {}]   ;;  %s905_s1 = inlined_call_operand.hbm [shape: bf16[128,128], index: 1, kind: input, shape index: {}]   ;;  %s906_s2 = inlined_call_operand.vmem [shape: f32[1,128], index: 2, kind: input, shape index: {}]   ;;  %s907_s3 = inlined_call_operand.vmem [shape: f32[1,128], index: 3, kind: input, shape index: {}]   ;;  %s908_s4 = inlined_call_operand.hbm [shape: bf16[128,128], index: 4, kind: output, shape index: {0}]   ;;  %s909_s5 = inlined_call_operand.hbm [shape: f32[1,1,128], index: 5, kind: output, shape index: {1}]   ;;  %s910_s6 = inlined_call_operand.hbm [shape: f32[1,1,128], index: 6, kind: output, shape index: {2}]  }
   0x1   :  { %13 = vsyncpa [#allocation6], 0 }
   0x2   :  { %14 = vsyncpa [#allocation4], 0 }
   0x3   :  { %15 = vsyncpa [#allocation9], 0  ;;  %s761_s21 = smov [#allocation2]   ;;  %s643_s3 = scalar_lea.hbm %s904_s0, 1024 }
   0x4   :  { %s21_s22 = sshll.u32 %s761_s21, 4  ;;  %p644_p0 = scmp.ne.s32.totalorder %s904_s0, %s643_s3  ;;  %s22_s22 = int_to_ptr.vmem [resolvable:$true] %s21_s22 }
   0x5   :  { %p647_p1 = scmp.lt.u32.totalorder %s643_s3, %s904_s0 }
   0x7   :  { %p649_p2 = pnand %p647_p1, %p644_p0 }
   0x9   :  { %652 = shalt.err (!%p649_p2)
}
   0xa   :  { %s653_s28 = scalar_lea.vmem %s22_s22, 1024  ;;  %p658_p4 = scmp.lt.s32.totalorder %s22_s22, %s22_s22 }
   0xb   :  { %p654_p3 = scmp.ne.s32.totalorder %s22_s22, %s653_s28  ;;  %p659_p5 = scmp.lt.s32.totalorder %s653_s28, %s653_s28 }
   0xd   :  { %p660_p6 = por %p659_p5, %p658_p4 }
   0xf   :  { %p661_p7 = pnand %p660_p6, %p654_p3 }
  0x11   :  { %664 = shalt.err (!%p661_p7)
}
  0x12   :  { %s762_s29 = smov 64   ;;  %s763_s30 = smov 4  }
  0x13   :  { %27 = dma.hbm_to_vmem [thread:$0]  %s904_s0, 1024, %s22_s22, [#allocation3], %s762_s29, %s762_s29, %s763_s30  }
  0x14   :  { %s764_s9 = smov [#allocation5]   ;;  %s665_s13 = scalar_lea.hbm %s905_s1, 1024 }
  0x15   :  { %s33_s10 = sshll.u32 %s764_s9, 4  ;;  %p666_p8 = scmp.ne.s32.totalorder %s905_s1, %s665_s13  ;;  %s34_s10 = int_to_ptr.vmem [resolvable:$true] %s33_s10 }
  0x16   :  { %p669_p9 = scmp.lt.u32.totalorder %s665_s13, %s905_s1 }
  0x18   :  { %p671_p10 = pnand %p669_p9, %p666_p8 }
  0x1a   :  { %674 = shalt.err (!%p671_p10)
}
  0x1b   :  { %s675_s18 = scalar_lea.vmem %s34_s10, 1024  ;;  %p680_p12 = scmp.lt.s32.totalorder %s34_s10, %s34_s10 }
  0x1c   :  { %p676_p11 = scmp.ne.s32.totalorder %s34_s10, %s675_s18  ;;  %p681_p13 = scmp.lt.s32.totalorder %s675_s18, %s675_s18 }
  0x1e   :  { %p682_p0 = por %p681_p13, %p680_p12 }
  0x20   :  { %p683_p1 = pnand %p682_p0, %p676_p11 }
  0x22   :  { %686 = shalt.err (!%p683_p1)
}
  0x23   :  { %39 = dma.hbm_to_vmem [thread:$0]  %s905_s1, 1024, %s34_s10, [#allocation6], %s762_s29, %s762_s29, %s763_s30  }
  0x24   :  { %753 = dma.done.wait [#allocation3], 1024  }
  0x25   :  { %754 = vsyncadd [#allocation3], 4294966272 }
  0x26   :  { %755 = dma.done.wait [#allocation6], 1024  }
  0x27   :  { %756 = vsyncadd [#allocation6], 4294966272  ;;  %v627_v0 = vld [vmem:[#allocation5] sm:$0xff]   ;;  %v628_v1 = vld [vmem:[#allocation5 + $0x8] sm:$0xff]   ;;  %s765_s1 = smov [#allocation7]  }
  0x28   :  { %572 = vmatprep.subr.bf16.mxu0 %v627_v0  ;;  %604 = vmatprep.subr.bf16.mxu1 %v627_v0  ;;  %v629_v2 = vld [vmem:[#allocation5 + $0x10] sm:$0xff]   ;;  %v630_v3 = vld [vmem:[#allocation5 + $0x18] sm:$0xff]   ;;  %v635_v4 = vld [vmem:[#allocation2] sm:$0xff]   ;;  %s421_s20 = sshll.u32 %s765_s1, 4  ;;  %s422_s20 = int_to_ptr.vmem [resolvable:$true] %s421_s20 }
  0x29   :  { %573 = vmatpush3.bf16.msra.mxu0 %v627_v0  ;;  %612 = vmatpush3.bf16.msra.mxu1 %v627_v0  ;;  %v631_v5 = vld [vmem:[#allocation5 + $0x20] sm:$0xff]   ;;  %v632_v7 = vld [vmem:[#allocation5 + $0x28] sm:$0xff]   ;;  %v633_v8 = vld [vmem:[#allocation5 + $0x30] sm:$0xff]   ;;  %s687_s21 = scalar_lea.vmem %s422_s20, 1024  ;;  %p692_p3 = scmp.lt.s32.totalorder %s422_s20, %s422_s20 }
  0x2a   :  { %574 = vmatprep.subr.bf16.mxu0 %v628_v1  ;;  %605 = vmatprep.subr.bf16.mxu1 %v628_v1  ;;  %v639_v6 = vld [vmem:[#allocation2 + $0x20] sm:$0xff]   ;;  %v634_v9 = vld [vmem:[#allocation5 + $0x38] sm:$0xff]   ;;  %v636_v10 = vld [vmem:[#allocation2 + $0x8] sm:$0xff]   ;;  %p688_p2 = scmp.ne.s32.totalorder %s422_s20, %s687_s21  ;;  %p693_p4 = scmp.lt.s32.totalorder %s687_s21, %s687_s21 }
  0x2b   :  { %588 = vmatprep.mubr.bf16.mxu0 %v635_v4  ;;  %596 = vmatprep.mubr.bf16.mxu1 %v639_v6  ;;  %v640_v11 = vld [vmem:[#allocation2 + $0x28] sm:$0xff]   ;;  %v637_v12 = vld [vmem:[#allocation2 + $0x10] sm:$0xff]   ;;  %v638_v14 = vld [vmem:[#allocation2 + $0x18] sm:$0xff]  }
  0x2c   :  { %v641_v13 = vld [vmem:[#allocation2 + $0x30] sm:$0xff]   ;;  %v642_v15 = vld [vmem:[#allocation2 + $0x38] sm:$0xff]   ;;  %p694_p5 = por %p693_p4, %p692_p3 }
  0x2d   :  { %575 = vmatpush3.bf16.msra.mxu0 %v628_v1  ;;  %613 = vmatpush3.bf16.msra.mxu1 %v628_v1 }
  0x2e   :  { %576 = vmatprep.subr.bf16.mxu0 %v629_v2  ;;  %606 = vmatprep.subr.bf16.mxu1 %v629_v2  ;;  %p695_p6 = pnand %p694_p5, %p688_p2 }
  0x31   :  { %577 = vmatpush3.bf16.msra.mxu0 %v629_v2  ;;  %614 = vmatpush3.bf16.msra.mxu1 %v629_v2 }
  0x32   :  { %578 = vmatprep.subr.bf16.mxu0 %v630_v3  ;;  %607 = vmatprep.subr.bf16.mxu1 %v630_v3 }
  0x35   :  { %579 = vmatpush3.bf16.msra.mxu0 %v630_v3  ;;  %615 = vmatpush3.bf16.msra.mxu1 %v630_v3 }
  0x36   :  { %580 = vmatprep.subr.bf16.mxu0 %v631_v5  ;;  %608 = vmatprep.subr.bf16.mxu1 %v631_v5 }
  0x39   :  { %581 = vmatpush3.bf16.msra.mxu0 %v631_v5  ;;  %616 = vmatpush3.bf16.msra.mxu1 %v631_v5 }
  0x3a   :  { %582 = vmatprep.subr.bf16.mxu0 %v632_v7  ;;  %609 = vmatprep.subr.bf16.mxu1 %v632_v7 }
  0x3d   :  { %583 = vmatpush3.bf16.msra.mxu0 %v632_v7  ;;  %617 = vmatpush3.bf16.msra.mxu1 %v632_v7 }
  0x3e   :  { %584 = vmatprep.subr.bf16.mxu0 %v633_v8  ;;  %610 = vmatprep.subr.bf16.mxu1 %v633_v8 }
  0x41   :  { %585 = vmatpush3.bf16.msra.mxu0 %v633_v8  ;;  %618 = vmatpush3.bf16.msra.mxu1 %v633_v8 }
  0x42   :  { %586 = vmatprep.subr.bf16.mxu0 %v634_v9  ;;  %611 = vmatprep.subr.bf16.mxu1 %v634_v9 }
  0x45   :  { %587 = vmatpush3.bf16.msra.mxu0 %v634_v9  ;;  %619 = vmatpush3.bf16.msra.mxu1 %v634_v9 }
  0x48   :  { %589 = vmatmul.mubr.bf16.vlgmr.msra.gmra.mrb[0].mxu0 %v636_v10  ;;  %597 = vmatmul.mubr.bf16.vlgmr.msra.gmra.mrb[0].mxu1 %v640_v11 }
  0x49   :  { %592 = vmatprep.mubr.bf16.mxu0 %v637_v12  ;;  %600 = vmatprep.mubr.bf16.mxu1 %v641_v13 }
  0x50   :  { %593 = vmatmul.mubr.bf16.gmra.mrb[4].mxu0 %v638_v14  ;;  %601 = vmatmul.mubr.bf16.gmra.mrb[4].mxu1 %v642_v15 }
 0x11b   :  { %v590_v16 = vpop.f32.mrb[0].mxu0  ;;  %v833_v17 = vpop.f32.mrb[0].mxu1 }
 0x11c   :  { %v213_v18 = vpop.f32.mrb[1].mxu0  ;;  %v835_v19 = vpop.f32.mrb[1].mxu1  ;;  %v300_v31 = vmul.f32 %v590_v16, %v590_v16 }
 0x11d   :  { %v591_v20 = vpop.f32.mrb[2].mxu0  ;;  %v837_v21 = vpop.f32.mrb[2].mxu1  ;;  %v298_v26 = vmul.f32 %v213_v18, %v213_v18  ;;  %v306_v61 = vmul.f32 %v835_v19, %v835_v19 }
 0x11e   :  { %v517_v22 = vpack.c.bf16 %v591_v20, %v590_v16  ;;  %v216_v23 = vpop.f32.mrb[3].mxu0  ;;  %v537_v24 = vpack.c.bf16 %v837_v21, %v833_v17  ;;  %v841_v25 = vpop.f32.mrb[3].mxu1  ;;  %v301_v34 = vmul.f32 %v591_v20, %v591_v20 }
 0x11f   :  { %v276_v27 = vadd.f32 %v216_v23, %v213_v18  ;;  %v299_v28 = vmul.f32 %v216_v23, %v216_v23  ;;  %v512_v29 = vpack.c.bf16 %v216_v23, %v213_v18  ;;  %v532_v30 = vpack.c.bf16 %v841_v25, %v835_v19 }
 0x120   :  { %549 = vst [vmem:[#allocation7 + $0x8] sm:$0xff] %v517_v22   ;;  %553 = vst [vmem:[#allocation7 + $0x28] sm:$0xff] %v537_v24  }
 0x121   :  { %v277_v32 = vadd.f32 %v590_v16, %v276_v27  ;;  %v314_v33 = vadd.f32 %v299_v28, %v298_v26  ;;  %513 = vst [vmem:[#allocation7] sm:$0xff] %v512_v29   ;;  %552 = vst [vmem:[#allocation7 + $0x20] sm:$0xff] %v532_v30  }
 0x123   :  { %v315_v35 = vadd.f32 %v314_v33, %v300_v31  ;;  %v594_v36 = vpop.f32.mrb[4].mxu0  ;;  %v278_v37 = vadd.f32 %v591_v20, %v277_v32  ;;  %v602_v38 = vpop.f32.mrb[4].mxu1 }
 0x124   :  { %v229_v39 = vpop.f32.mrb[5].mxu0  ;;  %v261_v40 = vpop.f32.mrb[5].mxu1  ;;  %v304_v55 = vmul.f32 %v594_v36, %v594_v36 }
 0x125   :  { %v279_v41 = vadd.f32 %v278_v37, %v229_v39  ;;  %v302_v42 = vmul.f32 %v229_v39, %v229_v39  ;;  %v316_v43 = vadd.f32 %v315_v35, %v301_v34  ;;  %v595_v44 = vpop.f32.mrb[6].mxu0  ;;  %v603_v45 = vpop.f32.mrb[6].mxu1 }
 0x126   :  { %v527_v46 = vpack.c.bf16 %v595_v44, %v594_v36  ;;  %v232_v47 = vpop.f32.mrb[7].mxu0  ;;  %v547_v48 = vpack.c.bf16 %v603_v45, %v602_v38  ;;  %v264_v49 = vpop.f32.mrb[7].mxu1  ;;  %v305_v58 = vmul.f32 %v595_v44, %v595_v44 }
 0x127   :  { %v317_v50 = vadd.f32 %v316_v43, %v302_v42  ;;  %v280_v51 = vadd.f32 %v279_v41, %v232_v47  ;;  %v303_v52 = vmul.f32 %v232_v47, %v232_v47  ;;  %v522_v53 = vpack.c.bf16 %v232_v47, %v229_v39 }
 0x128   :  { %551 = vst [vmem:[#allocation7 + $0x18] sm:$0xff] %v527_v46   ;;  %555 = vst [vmem:[#allocation7 + $0x38] sm:$0xff] %v547_v48   ;;  %v542_v54 = vpack.c.bf16 %v264_v49, %v261_v40 }
 0x129   :  { %v281_v56 = vadd.f32 %v594_v36, %v280_v51  ;;  %v318_v57 = vadd.f32 %v317_v50, %v303_v52  ;;  %550 = vst [vmem:[#allocation7 + $0x10] sm:$0xff] %v522_v53  }
 0x12a   :  { %554 = vst [vmem:[#allocation7 + $0x30] sm:$0xff] %v542_v54  }
 0x12b   :  { %v319_v59 = vadd.f32 %v318_v57, %v304_v55  ;;  %v282_v60 = vadd.f32 %v595_v44, %v281_v56 }
 0x12c   :  { %698 = shalt.err (!%p695_p6)
}
 0x12d   :  { %s699_s23 = scalar_lea.hbm %s908_s4, 1024 }
 0x12e   :  { %p700_p7 = scmp.ne.s32.totalorder %s908_s4, %s699_s23  ;;  %p703_p8 = scmp.lt.u32.totalorder %s699_s23, %s908_s4 }
 0x130   :  { %p705_p9 = pnand %p703_p8, %p700_p7 }
 0x132   :  { %708 = shalt.err (!%p705_p9)
}
 0x133   :  { %427 = dma.vmem_to_hbm [thread:$0]  %s422_s20, 1024, %s908_s4, [#allocation4], %s762_s29, %s762_s29, %s763_s30   ;;  %v283_v62 = vadd.f32 %v282_v60, %v835_v19  ;;  %v320_v63 = vadd.f32 %v319_v59, %v305_v58  ;;  %v307_v2 = vmul.f32 %v841_v25, %v841_v25  ;;  %v308_v3 = vmul.f32 %v833_v17, %v833_v17 }
 0x134   :  { %v309_v6 = vmul.f32 %v837_v21, %v837_v21  ;;  %v310_v9 = vmul.f32 %v261_v40, %v261_v40  ;;  %v311_v14 = vmul.f32 %v264_v49, %v264_v49  ;;  %v312_v15 = vmul.f32 %v602_v38, %v602_v38  ;;  %s766_s4 = smov [#allocation8]   ;;  %s767_s30 = smov [#allocation10]  }
 0x135   :  { %v321_v0 = vadd.f32 %v320_v63, %v306_v61  ;;  %v284_v1 = vadd.f32 %v283_v62, %v841_v25  ;;  %v313_v19 = vmul.f32 %v603_v45, %v603_v45  ;;  %s434_s29 = sshll.u32 %s766_s4, 4  ;;  %s444_s7 = sshll.u32 %s767_s30, 4  ;;  %s435_s29 = int_to_ptr.vmem [resolvable:$true] %s434_s29  ;;  %s872_s7 = int_to_ptr.vmem [resolvable:$true] %s444_s7 }
 0x136   :  { %s709_s8 = scalar_lea.vmem %s435_s29, 16  ;;  %s713_s9 = scalar_lea.vmem %s435_s29, 32 }
 0x137   :  { %v285_v4 = vadd.f32 %v833_v17, %v284_v1  ;;  %v322_v5 = vadd.f32 %v321_v0, %v307_v2  ;;  %p710_p10 = scmp.ne.s32.totalorder %s435_s29, %s709_s8  ;;  %p714_p11 = scmp.lt.s32.totalorder %s435_s29, %s435_s29 }
 0x138   :  { %p715_p12 = scmp.lt.s32.totalorder %s713_s9, %s709_s8 }
 0x139   :  { %v323_v7 = vadd.f32 %v322_v5, %v308_v3  ;;  %v286_v8 = vadd.f32 %v837_v21, %v285_v4 }
 0x13a   :  { %p716_p13 = por %p715_p12, %p714_p11 }
 0x13b   :  { %v287_v10 = vadd.f32 %v286_v8, %v261_v40  ;;  %v324_v11 = vadd.f32 %v323_v7, %v309_v6 }
 0x13c   :  { %p717_p0 = pnand %p716_p13, %p710_p10 }
 0x13d   :  { %v325_v12 = vadd.f32 %v324_v11, %v310_v9  ;;  %v288_v13 = vadd.f32 %v287_v10, %v264_v49 }
 0x13f   :  { %v289_v16 = vadd.f32 %v602_v38, %v288_v13  ;;  %v326_v18 = vadd.f32 %v325_v12, %v311_v14 }
 0x141   :  { %v290_v20 = vadd.f32 %v603_v45, %v289_v16  ;;  %v327_v22 = vadd.f32 %v326_v18, %v312_v15 }
 0x143   :  { %v291_v17 = vrot.slane %v290_v20, 4  ;;  %v328_v23 = vadd.f32 %v327_v22, %v313_v19 }
 0x145   :  { %v329_v24 = vrot.slane %v328_v23, 4  ;;  %v292_v25 = vadd.f32 %v291_v17, %v290_v20 }
 0x147   :  { %v293_v26 = vrot.slane %v292_v25, 2  ;;  %v330_v27 = vadd.f32 %v329_v24, %v328_v23 }
 0x149   :  { %v294_v28 = vadd.f32 %v293_v26, %v292_v25  ;;  %v331_v21 = vrot.slane %v330_v27, 2 }
 0x14b   :  { %v295_v29 = vrot.slane %v294_v28, 1  ;;  %v332_v30 = vadd.f32 %v331_v21, %v330_v27 }
 0x14d   :  { %v296_v31 = vadd.f32 %v295_v29, %v294_v28  ;;  %v333_v32 = vrot.slane %v332_v30, 1 }
 0x14f   :  { %297 = vst [vmem:[#allocation8] sm:$0x1] %v296_v31  ;;  %v334_v33 = vadd.f32 %v333_v32, %v332_v30 }
 0x150   :  { %720 = shalt.err (!%p717_p0)
}
 0x151   :  { %s721_s12 = scalar_lea.hbm %s909_s5, 16 }
 0x152   :  { %p722_p1 = scmp.ne.s32.totalorder %s909_s5, %s721_s12  ;;  %p725_p2 = scmp.lt.u32.totalorder %s721_s12, %s909_s5 }
 0x154   :  { %p727_p3 = pnand %p725_p2, %p722_p1 }
 0x156   :  { %730 = shalt.err (!%p727_p3)
}
 0x157   :  { %437 = dma.vmem_to_hbm [thread:$0]  %s435_s29, 16, %s909_s5, [#allocation9]   ;;  %335 = vst [vmem:[#allocation10] sm:$0x1] %v334_v33 }
 0x158   :  { %s731_s0 = scalar_lea.vmem %s872_s7, 16  ;;  %s735_s19 = scalar_lea.vmem %s872_s7, 32 }
 0x159   :  { %p732_p4 = scmp.ne.s32.totalorder %s872_s7, %s731_s0  ;;  %p736_p5 = scmp.lt.s32.totalorder %s872_s7, %s872_s7 }
 0x15a   :  { %p737_p6 = scmp.lt.s32.totalorder %s735_s19, %s731_s0 }
 0x15c   :  { %p738_p7 = por %p737_p6, %p736_p5 }
 0x15e   :  { %p739_p8 = pnand %p738_p7, %p732_p4 }
 0x160   :  { %742 = shalt.err (!%p739_p8)
}
 0x161   :  { %s743_s21 = scalar_lea.hbm %s910_s6, 16 }
 0x162   :  { %p744_p9 = scmp.ne.s32.totalorder %s910_s6, %s743_s21  ;;  %p747_p10 = scmp.lt.u32.totalorder %s743_s21, %s910_s6 }
 0x164   :  { %p749_p11 = pnand %p747_p10, %p744_p9 }
 0x166   :  { %752 = shalt.err (!%p749_p11)
}
 0x167   :  { %447 = dma.vmem_to_hbm [thread:$0]  %s872_s7, 16, %s910_s6, [#allocation9]  }
 0x168   :  { %757 = dma.done.wait [#allocation4], 1024  }
 0x169   :  { %758 = vsyncadd [#allocation4], 4294966272 }
 0x16a   :  { %759 = dma.done.wait [#allocation9], 32  }
 0x16b   :  { %760 = vsyncadd [#allocation9], 4294967264 }
 0x16c   :  { %457 = vsyncpa [#allocation3], 1 }
 0x16d   :  { %458 = vsyncpa [#allocation6], 1 }
 0x16e   :  { %459 = vsyncpa [#allocation4], 1 }
 0x16f   :  { %460 = vsyncpa [#allocation9], 1 }

</bundles_post_ra>
